<compile_context>
chip_gen: v7x
topology: tpu7x:2x2x1
jax: 0.10.0
libtpu: 0.0.40
codegen_flags: <defaults>
</compile_context>

<pallas_src>
import jax
import jax.numpy as jnp
from jax.experimental import pallas as pl
from jax.experimental.pallas import tpu as pltpu


def _maxpool3x3s2_kernel(x_ref, o_ref):
    # x_ref: (H, W, Cb) VMEM tile    o_ref: (Ho, Wo, Cb) VMEM tile
    Ho, Wo, _ = o_ref.shape

    # 3x3 stride-2 valid max pooling as 9 output-sized strided taps read
    # straight from the ref (the +dh/+dw shift is folded into the load
    # address; stride-2 on the two spatial dims, unit stride on lanes),
    # reduced with 8 VPU maxima in the input dtype.
    out = x_ref[pl.ds(0, Ho, stride=2), pl.ds(0, Wo, stride=2), :]
    for dh in range(3):
        for dw in range(3):
            if dh == 0 and dw == 0:
                continue
            tap = x_ref[pl.ds(dh, Ho, stride=2), pl.ds(dw, Wo, stride=2), :]
            out = jnp.maximum(out, tap)

    o_ref[...] = out.astype(o_ref.dtype)


def max_pool_branch_nhwc(x_nhwc, *, c_block=None):
    """MaxPool2d(kernel_size=3, stride=2, padding=0) on an NHWC tensor.

    Transpose-free fast path: channels map to TPU lanes, grid = (N, C // Cb).
    """
    N, H, W, C = x_nhwc.shape
    assert H >= 3 and W >= 3, "3x3 valid pooling needs H, W >= 3"
    Ho = (H - 3) // 2 + 1
    Wo = (W - 3) // 2 + 1

    # Channel blocking: keep the lane dim a multiple of 128 when possible so
    # output stores stay unmasked; otherwise take the full channel extent
    # (avoid Cb < 128 partial-lane blocks).
    if c_block is None:
        c_block = 128 if (C % 128 == 0) else C
    assert C % c_block == 0
    n_cblocks = C // c_block

    return pl.pallas_call(
        _maxpool3x3s2_kernel,
        out_shape=jax.ShapeDtypeStruct((N, Ho, Wo, C), x_nhwc.dtype),
        grid_spec=pltpu.PrefetchScalarGridSpec(
            num_scalar_prefetch=0,
            grid=(N, n_cblocks),
            in_specs=[
                pl.BlockSpec((None, H, W, c_block), lambda n, c: (n, 0, 0, c)),
            ],
            out_specs=pl.BlockSpec(
                (None, Ho, Wo, c_block), lambda n, c: (n, 0, 0, c)
            ),
        ),
        compiler_params=pltpu.CompilerParams(
            dimension_semantics=("parallel", "parallel"),
        ),
    )(x_nhwc)


def max_pool_branch(x_nchw):
    """Drop-in forward of the PyTorch MaxPoolBranch (NCHW in / NCHW out).

    The pooling itself runs in NHWC. If the surrounding model is (or can be)
    NHWC, call max_pool_branch_nhwc directly and skip these two transposes:
    this op is HBM-bandwidth bound and the layout round-trips roughly triple
    its HBM traffic.
    """
    # TODO(synk): fold these transposes into neighboring ops / run the model in NHWC.
    x_nhwc = jnp.transpose(x_nchw, (0, 2, 3, 1))   # NCHW -> NHWC
    y_nhwc = max_pool_branch_nhwc(x_nhwc)
    return jnp.transpose(y_nhwc, (0, 3, 1, 2))     # NHWC -> NCHW


if __name__ == "__main__":
    key = jax.random.PRNGKey(0)

    # --- Test 1: NCHW drop-in path (matches the PyTorch module interface). ---
    x = jax.random.normal(key, (2, 4, 16, 16), dtype=jnp.float32)
    y = max_pool_branch(x)
    jax.block_until_ready(y)

    ref = jax.lax.reduce_window(
        x, -jnp.inf, jax.lax.max,
        window_dimensions=(1, 1, 3, 3),
        window_strides=(1, 1, 2, 2),
        padding="VALID",
    )
    assert y.shape == (2, 4, 7, 7), y.shape
    assert jnp.allclose(y, ref), "Pallas maxpool (NCHW wrapper) mismatch"

    # --- Test 2: NHWC fast path with 128-wide channel blocks, odd spatial. ---
    key2 = jax.random.PRNGKey(1)
    x2 = jax.random.normal(key2, (2, 17, 17, 256), dtype=jnp.float32)
    y2 = max_pool_branch_nhwc(x2)
    jax.block_until_ready(y2)

    ref2 = jax.lax.reduce_window(
        x2, -jnp.inf, jax.lax.max,
        window_dimensions=(1, 3, 3, 1),
        window_strides=(1, 2, 2, 1),
        padding="VALID",
    )
    assert y2.shape == (2, 8, 8, 256), y2.shape
    assert jnp.allclose(y2, ref2), "Pallas maxpool (NHWC path) mismatch"

    print("KERNEL_OK")
</pallas_src>

<mosaic_0001>
module attributes {stable_mosaic.version = 11 : i64} {
  func.func @_maxpool3x3s2_kernel(%arg0: i32, %arg1: i32, %arg2: memref<1x16x16x4xf32, #tpu.memory_space<vmem>>, %arg3: memref<1x7x7x4xf32, #tpu.memory_space<vmem>>) attributes {dimension_semantics = [#tpu.dimension_semantics<parallel>, #tpu.dimension_semantics<parallel>], iteration_bounds = array<i64: 2, 1>, scalar_prefetch = 0 : i64, scratch_operands = 0 : i64, tpu.core_type = #tpu.core_type<tc>, window_params = [{transform_indices = @transform_0, window_bounds = array<i64: 1, 16, 16, 4>}, {transform_indices = @transform_1, window_bounds = array<i64: 1, 7, 7, 4>}]} {
    %c0 = arith.constant 0 : index
    %c0_0 = arith.constant 0 : index
    %c0_1 = arith.constant 0 : index
    %c0_2 = arith.constant 0 : index
    %0 = tpu.strided_load %arg2[%c0, %c0_0, %c0_1, %c0_2] {strides = array<i32: 1, 2, 2, 1>} : memref<1x16x16x4xf32, #tpu.memory_space<vmem>>, vector<1x7x7x4xf32>
    %1 = vector.shape_cast %0 : vector<1x7x7x4xf32> to vector<7x7x4xf32>
    %c0_3 = arith.constant 0 : index
    %c0_4 = arith.constant 0 : index
    %c1 = arith.constant 1 : index
    %c0_5 = arith.constant 0 : index
    %2 = tpu.strided_load %arg2[%c0_3, %c0_4, %c1, %c0_5] {strides = array<i32: 1, 2, 2, 1>} : memref<1x16x16x4xf32, #tpu.memory_space<vmem>>, vector<1x7x7x4xf32>
    %3 = vector.shape_cast %2 : vector<1x7x7x4xf32> to vector<7x7x4xf32>
    %4 = arith.maximumf %1, %3 : vector<7x7x4xf32>
    %c0_6 = arith.constant 0 : index
    %c0_7 = arith.constant 0 : index
    %c2 = arith.constant 2 : index
    %c0_8 = arith.constant 0 : index
    %5 = tpu.strided_load %arg2[%c0_6, %c0_7, %c2, %c0_8] {strides = array<i32: 1, 2, 2, 1>} : memref<1x16x16x4xf32, #tpu.memory_space<vmem>>, vector<1x7x7x4xf32>
    %6 = vector.shape_cast %5 : vector<1x7x7x4xf32> to vector<7x7x4xf32>
    %7 = arith.maximumf %4, %6 : vector<7x7x4xf32>
    %c0_9 = arith.constant 0 : index
    %c1_10 = arith.constant 1 : index
    %c0_11 = arith.constant 0 : index
    %c0_12 = arith.constant 0 : index
    %8 = tpu.strided_load %arg2[%c0_9, %c1_10, %c0_11, %c0_12] {strides = array<i32: 1, 2, 2, 1>} : memref<1x16x16x4xf32, #tpu.memory_space<vmem>>, vector<1x7x7x4xf32>
    %9 = vector.shape_cast %8 : vector<1x7x7x4xf32> to vector<7x7x4xf32>
    %10 = arith.maximumf %7, %9 : vector<7x7x4xf32>
    %c0_13 = arith.constant 0 : index
    %c1_14 = arith.constant 1 : index
    %c1_15 = arith.constant 1 : index
    %c0_16 = arith.constant 0 : index
    %11 = tpu.strided_load %arg2[%c0_13, %c1_14, %c1_15, %c0_16] {strides = array<i32: 1, 2, 2, 1>} : memref<1x16x16x4xf32, #tpu.memory_space<vmem>>, vector<1x7x7x4xf32>
    %12 = vector.shape_cast %11 : vector<1x7x7x4xf32> to vector<7x7x4xf32>
    %13 = arith.maximumf %10, %12 : vector<7x7x4xf32>
    %c0_17 = arith.constant 0 : index
    %c1_18 = arith.constant 1 : index
    %c2_19 = arith.constant 2 : index
    %c0_20 = arith.constant 0 : index
    %14 = tpu.strided_load %arg2[%c0_17, %c1_18, %c2_19, %c0_20] {strides = array<i32: 1, 2, 2, 1>} : memref<1x16x16x4xf32, #tpu.memory_space<vmem>>, vector<1x7x7x4xf32>
    %15 = vector.shape_cast %14 : vector<1x7x7x4xf32> to vector<7x7x4xf32>
    %16 = arith.maximumf %13, %15 : vector<7x7x4xf32>
    %c0_21 = arith.constant 0 : index
    %c2_22 = arith.constant 2 : index
    %c0_23 = arith.constant 0 : index
    %c0_24 = arith.constant 0 : index
    %17 = tpu.strided_load %arg2[%c0_21, %c2_22, %c0_23, %c0_24] {strides = array<i32: 1, 2, 2, 1>} : memref<1x16x16x4xf32, #tpu.memory_space<vmem>>, vector<1x7x7x4xf32>
    %18 = vector.shape_cast %17 : vector<1x7x7x4xf32> to vector<7x7x4xf32>
    %19 = arith.maximumf %16, %18 : vector<7x7x4xf32>
    %c0_25 = arith.constant 0 : index
    %c2_26 = arith.constant 2 : index
    %c1_27 = arith.constant 1 : index
    %c0_28 = arith.constant 0 : index
    %20 = tpu.strided_load %arg2[%c0_25, %c2_26, %c1_27, %c0_28] {strides = array<i32: 1, 2, 2, 1>} : memref<1x16x16x4xf32, #tpu.memory_space<vmem>>, vector<1x7x7x4xf32>
    %21 = vector.shape_cast %20 : vector<1x7x7x4xf32> to vector<7x7x4xf32>
    %22 = arith.maximumf %19, %21 : vector<7x7x4xf32>
    %c0_29 = arith.constant 0 : index
    %c2_30 = arith.constant 2 : index
    %c2_31 = arith.constant 2 : index
    %c0_32 = arith.constant 0 : index
    %23 = tpu.strided_load %arg2[%c0_29, %c2_30, %c2_31, %c0_32] {strides = array<i32: 1, 2, 2, 1>} : memref<1x16x16x4xf32, #tpu.memory_space<vmem>>, vector<1x7x7x4xf32>
    %24 = vector.shape_cast %23 : vector<1x7x7x4xf32> to vector<7x7x4xf32>
    %25 = arith.maximumf %22, %24 : vector<7x7x4xf32>
    %c0_33 = arith.constant 0 : index
    %c0_34 = arith.constant 0 : index
    %c0_35 = arith.constant 0 : index
    %c0_36 = arith.constant 0 : index
    %26 = vector.load %arg3[%c0_33, %c0_34, %c0_35, %c0_36] : memref<1x7x7x4xf32, #tpu.memory_space<vmem>>, vector<1x7x7x4xf32>
    %27 = vector.shape_cast %26 : vector<1x7x7x4xf32> to vector<7x7x4xf32>
    %28 = vector.shape_cast %25 : vector<7x7x4xf32> to vector<1x7x7x4xf32>
    tpu.vector_store %arg3[%c0_33, %c0_34, %c0_35, %c0_36], %28 {strides = array<i32>} : memref<1x7x7x4xf32, #tpu.memory_space<vmem>>, vector<1x7x7x4xf32>,
    return
  }
  func.func @transform_0(%arg0: i32, %arg1: i32) -> (i32, i32, i32, i32) {
    %c0_i32 = arith.constant 0 : i32
    %c0_i32_0 = arith.constant 0 : i32
    %c0_i32_1 = arith.constant 0 : i32
    return %arg0, %c0_i32, %c0_i32_0, %arg1 : i32, i32, i32, i32
  }
  func.func @transform_1(%arg0: i32, %arg1: i32) -> (i32, i32, i32, i32) {
    %c0_i32 = arith.constant 0 : i32
    %c0_i32_0 = arith.constant 0 : i32
    %c0_i32_1 = arith.constant 0 : i32
    return %arg0, %c0_i32, %c0_i32_0, %arg1 : i32, i32, i32, i32
  }
}

</mosaic_0001>

<bundles_post_ra>
// kernel: tpu_custom_call.1
= control target key start
LH: loop header
LB: loop body
LE: loop exit
PB: predicated region body
PF: predicated region fallthrough
CT: control target
= control target key end

     0   :  { %s592_s6 = smov 0   ;;  %s594_s7 = smov 0   ;;  %s710_s0 = inlined_call_operand.vmem [shape: f32[2,16,16,4], index: 0, kind: input, shape index: {}]   ;;  %s711_s1 = inlined_call_operand.vmem [shape: f32[2,7,7,4], index: 1, kind: output, shape index: {}]  }
   0x1   :  { %s596_s8 = smov 0  }
   0x2 LB: > { %s23_s9 = sadd.s32 1, %s576_s7  ;;  %p464_p0 = scmp.ge.s32.totalorder %s580_s8, 1  ;;  %s580_s8 = sphi %s596_s8, %s11_s8   ;;  %s576_s7 = sphi %s594_s7, %s713_s7   ;;  %s572_s6 = sphi %s592_s6, %s712_s6  }
   0x3   : > { %p25_p1 = scmp.ge.s32.totalorder %s23_s9, 2  ;;  %p106_p2 = scmp.lt.s32.totalorder %s580_s8, 3 }
   0x5   : > { %s715_s9 = smov (%p25_p1, %s23_s9), 0  ;;  %p107_p3 = pnand %p464_p0, %p106_p2 }
   0x6   : > { %p132_p4 = scmp.lt.s32.totalorder (!%p107_p3), %s572_s6, 1  ;;  %vm329_vm0 = vcmask (!%p107_p3), 30720  }
   0x7   : > { %110 = sbr.rel (%p107_p3) target bundleno = 61 (0x3d), region = 24 }
   0xe   : > { %s717_s6 = smov (!%p132_p4, %s572_s6), 1 }
   0xf   : > { %s532_s10 = sshll.u32 %s717_s6, 8  ;;  %s533_s14 = smul.u32 56, %s717_s6 }
  0x10   : > { %s616_s13 = scalar_lea.vmem %s710_s0, %s532_s10 }
  0x11   : > { %v148_v0 = vld [vmem:[%s616_s13] ss:$2 sm:$0x7f]  ;;  %v474_v1 = vld [vmem:[%s616_s13 + $0x1] ss:$2 sm:$0x7f]  ;;  %s644_s17 = scalar_lea.vmem %s711_s1, %s533_s14 }
  0x12   : > { %v175_v2 = vmax.f32 %v148_v0, %v474_v1  ;;  %v481_v3 = vld [vmem:[%s616_s13 + $0x2] ss:$2 sm:$0x7f]  ;;  %v488_v4 = vld [vmem:[%s616_s13 + $0x10] ss:$2 sm:$0x7f] }
  0x13   : > { %v495_v6 = vld [vmem:[%s616_s13 + $0x11] ss:$2 sm:$0x7f]  ;;  %v468_v7 = vld [vmem:[%s616_s13 + $0x20] ss:$2 sm:$0x7f] }
  0x14   : > { %v196_v5 = vmax.f32 %v175_v2, %v481_v3  ;;  %v475_v9 = vld [vmem:[%s616_s13 + $0x21] ss:$2 sm:$0x7f]  ;;  %v482_v10 = vld [vmem:[%s616_s13 + $0x22] ss:$2 sm:$0x7f] }
  0x15   : > { %v502_v11 = vld [vmem:[%s616_s13 + $0x12] ss:$2 sm:$0x7f]  ;;  %v176_v12 = vmax.f32 %v468_v7, %v475_v9  ;;  %v509_v15 = vld [vmem:[%s616_s13 + $0x20] ss:$2 sm:$0x7f] }
  0x16   : > { %v217_v8 = vmax.f32 %v196_v5, %v488_v4  ;;  %v489_v14 = vld [vmem:[%s616_s13 + $0x30] ss:$2 sm:$0x7f]  ;;  %v496_v17 = vld [vmem:[%s616_s13 + $0x31] ss:$2 sm:$0x7f] }
  0x17   : > { %v197_v16 = vmax.f32 %v176_v12, %v482_v10  ;;  %v469_v19 = vld [vmem:[%s616_s13 + $0x40] ss:$2 sm:$0x7f]  ;;  %v476_v20 = vld [vmem:[%s616_s13 + $0x41] ss:$2 sm:$0x7f] }
  0x18   : > { %v238_v13 = vmax.f32 %v217_v8, %v495_v6  ;;  %v516_v21 = vld [vmem:[%s616_s13 + $0x21] ss:$2 sm:$0x7f]  ;;  %v177_v23 = vmax.f32 %v469_v19, %v476_v20  ;;  %v483_v24 = vld [vmem:[%s616_s13 + $0x42] ss:$2 sm:$0x7f] }
  0x19   : > { %v218_v22 = vmax.f32 %v197_v16, %v489_v14  ;;  %v503_v26 = vld [vmem:[%s616_s13 + $0x32] ss:$2 sm:$0x7f]  ;;  %v523_v28 = vld [vmem:[%s616_s13 + $0x22] ss:$2 sm:$0x7f] }
  0x1a   : > { %v259_v18 = vmax.f32 %v238_v13, %v502_v11  ;;  %v490_v27 = vld [vmem:[%s616_s13 + $0x50] ss:$2 sm:$0x7f]  ;;  %v510_v30 = vld [vmem:[%s616_s13 + $0x40] ss:$2 sm:$0x7f]  ;;  %v198_v31 = vmax.f32 %v177_v23, %v483_v24 }
  0x1b   : > { %v239_v29 = vmax.f32 %v218_v22, %v496_v17  ;;  %v497_v33 = vld [vmem:[%s616_s13 + $0x51] ss:$2 sm:$0x7f]  ;;  %v470_v34 = vld [vmem:[%s616_s13 + $0x60] ss:$2 sm:$0x7f] }
  0x1c   : > { %v280_v25 = vmax.f32 %v259_v18, %v509_v15  ;;  %v219_v36 = vmax.f32 %v198_v31, %v490_v27  ;;  %v477_v37 = vld [vmem:[%s616_s13 + $0x61] ss:$2 sm:$0x7f]  ;;  %v484_v38 = vld [vmem:[%s616_s13 + $0x62] ss:$2 sm:$0x7f] }
  0x1d   : > { %v260_v35 = vmax.f32 %v239_v29, %v503_v26  ;;  %v517_v40 = vld [vmem:[%s616_s13 + $0x41] ss:$2 sm:$0x7f]  ;;  %v504_v41 = vld [vmem:[%s616_s13 + $0x52] ss:$2 sm:$0x7f]  ;;  %v178_v42 = vmax.f32 %v470_v34, %v477_v37 }
  0x1e   : > { %v301_v32 = vmax.f32 %v280_v25, %v516_v21  ;;  %v524_v44 = vld [vmem:[%s616_s13 + $0x42] ss:$2 sm:$0x7f]  ;;  %v240_v45 = vmax.f32 %v219_v36, %v497_v33  ;;  %v491_v46 = vld [vmem:[%s616_s13 + $0x70] ss:$2 sm:$0x7f] }
  0x1f   : > { %v281_v43 = vmax.f32 %v260_v35, %v510_v30  ;;  %v511_v47 = vld [vmem:[%s616_s13 + $0x60] ss:$2 sm:$0x7f]  ;;  %v199_v48 = vmax.f32 %v178_v42, %v484_v38  ;;  %v498_v49 = vld [vmem:[%s616_s13 + $0x71] ss:$2 sm:$0x7f] }
  0x20   : > { %v322_v39 = vmax.f32 %v301_v32, %v523_v28  ;;  %v261_v51 = vmax.f32 %v240_v45, %v504_v41  ;;  %v471_v52 = vld [vmem:[%s616_s13 + $0x80] ss:$2 sm:$0x7f]  ;;  %v478_v53 = vld [vmem:[%s616_s13 + $0x81] ss:$2 sm:$0x7f] }
  0x21   : > { %v302_v50 = vmax.f32 %v281_v43, %v517_v40  ;;  %v518_v54 = vld [vmem:[%s616_s13 + $0x61] ss:$2 sm:$0x7f]  ;;  %v220_v55 = vmax.f32 %v199_v48, %v491_v46  ;;  %v179_v56 = vmax.f32 %v471_v52, %v478_v53  ;;  %v485_v57 = vld [vmem:[%s616_s13 + $0x82] ss:$2 sm:$0x7f] }
  0x22   : > { %330 = vst.msk [vmem:[%s644_s17] sm:$0x7f] %vm329_vm0, %v322_v39  ;;  %v282_v59 = vmax.f32 %v261_v51, %v511_v47  ;;  %v505_v60 = vld [vmem:[%s616_s13 + $0x72] ss:$2 sm:$0x7f] }
  0x23   : > { %v323_v58 = vmax.f32 %v302_v50, %v524_v44  ;;  %v492_v61 = vld [vmem:[%s616_s13 + $0x90] ss:$2 sm:$0x7f]  ;;  %v525_v62 = vld [vmem:[%s616_s13 + $0x62] ss:$2 sm:$0x7f]  ;;  %v241_v63 = vmax.f32 %v220_v55, %v498_v49  ;;  %v200_v1 = vmax.f32 %v179_v56, %v485_v57 }
  0x24   : > { %v512_v0 = vld [vmem:[%s616_s13 + $0x80] ss:$2 sm:$0x7f]  ;;  %v303_v2 = vmax.f32 %v282_v59, %v518_v54  ;;  %v499_v3 = vld [vmem:[%s616_s13 + $0x91] ss:$2 sm:$0x7f] }
  0x25   : > { %331 = vst.msk [vmem:[%s644_s17 + $0x8] sm:$0x7f] %vm329_vm0, %v323_v58  ;;  %v472_v4 = vld [vmem:[%s616_s13 + $0xa0] ss:$2 sm:$0x7f]  ;;  %v262_v5 = vmax.f32 %v241_v63, %v505_v60  ;;  %v221_v6 = vmax.f32 %v200_v1, %v492_v61 }
  0x26   : > { %v479_v7 = vld [vmem:[%s616_s13 + $0xa1] ss:$2 sm:$0x7f]  ;;  %v486_v8 = vld [vmem:[%s616_s13 + $0xa2] ss:$2 sm:$0x7f]  ;;  %v324_v9 = vmax.f32 %v303_v2, %v525_v62 }
  0x27   : > { %v519_v10 = vld [vmem:[%s616_s13 + $0x81] ss:$2 sm:$0x7f]  ;;  %v506_v11 = vld [vmem:[%s616_s13 + $0x92] ss:$2 sm:$0x7f]  ;;  %v180_v12 = vmax.f32 %v472_v4, %v479_v7  ;;  %v283_v13 = vmax.f32 %v262_v5, %v512_v0  ;;  %v242_v15 = vmax.f32 %v221_v6, %v499_v3 }
  0x28   : > { %v526_v14 = vld [vmem:[%s616_s13 + $0x82] ss:$2 sm:$0x7f]  ;;  %v493_v16 = vld [vmem:[%s616_s13 + $0xb0] ss:$2 sm:$0x7f] }
  0x29   : > { %332 = vst.msk [vmem:[%s644_s17 + $0x10] sm:$0x7f] %vm329_vm0, %v324_v9  ;;  %v513_v17 = vld [vmem:[%s616_s13 + $0xa0] ss:$2 sm:$0x7f]  ;;  %v201_v18 = vmax.f32 %v180_v12, %v486_v8  ;;  %v304_v20 = vmax.f32 %v283_v13, %v519_v10  ;;  %v263_v21 = vmax.f32 %v242_v15, %v506_v11 }
  0x2a   : > { %v500_v19 = vld [vmem:[%s616_s13 + $0xb1] ss:$2 sm:$0x7f]  ;;  %v473_v22 = vld [vmem:[%s616_s13 + $0xc0] ss:$2 sm:$0x7f] }
  0x2b   : > { %v480_v23 = vld [vmem:[%s616_s13 + $0xc1] ss:$2 sm:$0x7f]  ;;  %v222_v25 = vmax.f32 %v201_v18, %v493_v16  ;;  %v487_v27 = vld [vmem:[%s616_s13 + $0xc2] ss:$2 sm:$0x7f]  ;;  %v325_v28 = vmax.f32 %v304_v20, %v526_v14  ;;  %v284_v29 = vmax.f32 %v263_v21, %v513_v17 }
  0x2c   : > { %v520_v24 = vld [vmem:[%s616_s13 + $0xa1] ss:$2 sm:$0x7f]  ;;  %v181_v26 = vmax.f32 %v473_v22, %v480_v23  ;;  %v507_v30 = vld [vmem:[%s616_s13 + $0xb2] ss:$2 sm:$0x7f] }
  0x2d   : > { %v494_v31 = vld [vmem:[%s616_s13 + $0xd0] ss:$2 sm:$0x7f]  ;;  %v527_v32 = vld [vmem:[%s616_s13 + $0xa2] ss:$2 sm:$0x7f]  ;;  %v243_v33 = vmax.f32 %v222_v25, %v500_v19  ;;  %v305_v35 = vmax.f32 %v284_v29, %v520_v24 }
  0x2e   : > { %v202_v34 = vmax.f32 %v181_v26, %v487_v27  ;;  %333 = vst.msk [vmem:[%s644_s17 + $0x18] sm:$0x7f] %vm329_vm0, %v325_v28  ;;  %v514_v36 = vld [vmem:[%s616_s13 + $0xc0] ss:$2 sm:$0x7f] }
  0x2f   : > { %v501_v37 = vld [vmem:[%s616_s13 + $0xd1] ss:$2 sm:$0x7f]  ;;  %v264_v38 = vmax.f32 %v243_v33, %v507_v30  ;;  %v326_v40 = vmax.f32 %v305_v35, %v527_v32  ;;  %v521_v41 = vld [vmem:[%s616_s13 + $0xc1] ss:$2 sm:$0x7f] }
  0x30   : > { %v223_v39 = vmax.f32 %v202_v34, %v494_v31  ;;  %v508_v42 = vld [vmem:[%s616_s13 + $0xd2] ss:$2 sm:$0x7f]  ;;  %v528_v45 = vld [vmem:[%s616_s13 + $0xc2] ss:$2 sm:$0x7f] }
  0x31   : > { %v285_v43 = vmax.f32 %v264_v38, %v514_v36  ;;  %334 = vst.msk [vmem:[%s644_s17 + $0x20] sm:$0x7f] %vm329_vm0, %v326_v40  ;;  %v515_v46 = vld [vmem:[%s616_s13 + $0xe0] ss:$2 sm:$0x7f] }
  0x32   : > { %v244_v44 = vmax.f32 %v223_v39, %v501_v37  ;;  %v522_v49 = vld [vmem:[%s616_s13 + $0xe1] ss:$2 sm:$0x7f]  ;;  %v529_v52 = vld [vmem:[%s616_s13 + $0xe2] ss:$2 sm:$0x7f] }
  0x33   : > { %v306_v47 = vmax.f32 %v285_v43, %v521_v41 }
  0x34   : > { %v265_v48 = vmax.f32 %v244_v44, %v508_v42 }
  0x35   : > { %v327_v50 = vmax.f32 %v306_v47, %v528_v45 }
  0x36   : > { %v286_v51 = vmax.f32 %v265_v48, %v515_v46 }
  0x37   : > { %335 = vst.msk [vmem:[%s644_s17 + $0x28] sm:$0x7f] %vm329_vm0, %v327_v50 }
  0x38   : > { %v307_v53 = vmax.f32 %v286_v51, %v522_v49 }
  0x3a   : > { %v328_v54 = vmax.f32 %v307_v53, %v529_v52 }
  0x3c   : > { %336 = vst.msk [vmem:[%s644_s17 + $0x30] sm:$0x7f] %vm329_vm0, %v328_v54 }
  0x3d PF: > { %s11_s8 = sadd.s32 1, %s580_s8   ;;  %s712_s6 = smov %s576_s7 }
  0x3e   : > { %p8_p5 = scmp.ge.s32.totalorder %s11_s8, 4   ;;  %s713_s7 = smov %s715_s9 }
  0x40   :  { %10 = sbr.rel (!%p8_p5) target bundleno = 2 (0x2), region = 116 }

</bundles_post_ra>
